<compile_context>
chip_gen: v7x
topology: tpu7x:2x2x1
jax: 0.10.0
libtpu: 0.0.40
codegen_flags: <defaults>
</compile_context>

<pallas_src>
import jax
import jax.numpy as jnp
from jax.experimental import pallas as pl
from jax.experimental.pallas import tpu as pltpu


def linear_permute_kernel(x_ref, w_ref, o_ref):
    # x_ref: (B, S, K) activations
    # w_ref: (O, K)    flattened weight (natural F.linear layout)
    # o_ref: (B, O, S) = permute(x @ W.T, (0, 2, 1)), fused in-kernel
    w = w_ref[...].astype(jnp.float32)          # (O, K)
    batch = x_ref.shape[0]
    k_dim = w.shape[1]

    for b in range(batch):                      # B is tiny & static: unrolled
        # One small XLU transpose per batch puts S on the lane axis so the
        # result is produced directly in the permuted (O, S) layout.
        xbt = x_ref[b].astype(jnp.float32).T    # (K, S)

        # out_b[o, s] = sum_k w[o, k] * x[b, s, k]
        # K is tiny: unroll on the VPU — each term is a lane-broadcast of a
        # weight column times a sublane-broadcast of a transposed-x row.
        acc = w[:, 0:1] * xbt[0:1, :]           # (O, 1) * (1, S) -> (O, S)
        for k in range(1, k_dim):
            acc = acc + w[:, k:k + 1] * xbt[k:k + 1, :]

        o_ref[b] = acc.astype(o_ref.dtype)


def _linear_permute_impl(x, weight_param):
    # weight_param has the PyTorch parameter shape (1, 2, 5, 2); flatten all
    # leading dims into out_features, keep the trailing dim as in_features.
    B, S, K = x.shape
    w2d = weight_param.reshape(-1, weight_param.shape[-1])  # (O, K)
    O = w2d.shape[0]
    assert w2d.shape[1] == K, "in_features mismatch"

    itemsize = 4  # f32
    cost = pl.CostEstimate(
        flops=2 * B * S * K * O,
        transcendentals=0,
        bytes_accessed=(B * S * K + O * K + B * O * S) * itemsize,
    )

    return pl.pallas_call(
        linear_permute_kernel,
        out_shape=jax.ShapeDtypeStruct((B, O, S), x.dtype),
        in_specs=[
            pl.BlockSpec(memory_space=pltpu.MemorySpace.VMEM),
            pl.BlockSpec(memory_space=pltpu.MemorySpace.VMEM),
        ],
        out_specs=pl.BlockSpec(memory_space=pltpu.MemorySpace.VMEM),
        cost_estimate=cost,
    )(x, w2d)


linear_permute = jax.jit(_linear_permute_impl)


if __name__ == "__main__":
    key = jax.random.PRNGKey(0)
    kx, kw = jax.random.split(key)

    # Input consistent with the module: x1 = torch.randn(2, 3, 2)
    x1 = jax.random.normal(kx, (2, 3, 2), dtype=jnp.float32)

    # Module parameter shape (1, 2, 5, 2).  Use nonzero random values so the
    # correctness check is meaningful (the PyTorch module inits it to zeros).
    weight = jax.random.normal(kw, (1, 2, 5, 2), dtype=jnp.float32)

    out = jax.block_until_ready(linear_permute(x1, weight))

    # Reference in plain JAX (same flattening interpretation).
    w2d_ref = weight.reshape(-1, weight.shape[-1])          # (10, 2)
    ref = jnp.einsum("bsk,ok->bos", x1, w2d_ref)            # (2, 10, 3)
    assert out.shape == (2, 10, 3), out.shape
    assert jnp.allclose(out, ref, atol=1e-5, rtol=1e-5), "mismatch vs reference"

    # Also exercise the zero-initialized parameter exactly as in __init__.
    zero_w = jnp.zeros((1, 2, 5, 2), dtype=jnp.float32)
    out_zero = jax.block_until_ready(linear_permute(x1, zero_w))
    assert jnp.allclose(out_zero, jnp.zeros((2, 10, 3), jnp.float32))

    print("KERNEL_OK")
</pallas_src>

<mosaic_0001>
module attributes {stable_mosaic.version = 11 : i64} {
  func.func @linear_permute_kernel(%arg0: memref<2x3x2xf32, #tpu.memory_space<vmem>>, %arg1: memref<10x2xf32, #tpu.memory_space<vmem>>, %arg2: memref<2x10x3xf32, #tpu.memory_space<vmem>>) attributes {dimension_semantics = [], scalar_prefetch = 0 : i64, scratch_operands = 0 : i64, tpu.core_type = #tpu.core_type<tc>} {
    %c0 = arith.constant 0 : index
    %c0_0 = arith.constant 0 : index
    %0 = vector.load %arg1[%c0, %c0_0] : memref<10x2xf32, #tpu.memory_space<vmem>>, vector<10x2xf32>
    %c0_1 = arith.constant 0 : index
    %c0_2 = arith.constant 0 : index
    %c0_3 = arith.constant 0 : index
    %1 = vector.load %arg0[%c0_1, %c0_2, %c0_3] : memref<2x3x2xf32, #tpu.memory_space<vmem>>, vector<1x3x2xf32>
    %2 = vector.shape_cast %1 : vector<1x3x2xf32> to vector<3x2xf32>
    %3 = tpu.transpose %2, [1, 0] : vector<3x2xf32> -> vector<2x3xf32>
    %4 = vector.extract_strided_slice %0 {offsets = [0, 0], sizes = [10, 1], strides = [1, 1]} : vector<10x2xf32> to vector<10x1xf32>
    %5 = vector.extract_strided_slice %3 {offsets = [0, 0], sizes = [1, 3], strides = [1, 1]} : vector<2x3xf32> to vector<1x3xf32>
    %6 = vector.broadcast %4 : vector<10x1xf32> to vector<10x3xf32>
    %7 = vector.broadcast %5 : vector<1x3xf32> to vector<10x3xf32>
    %8 = arith.mulf %6, %7 : vector<10x3xf32>
    %9 = vector.extract_strided_slice %0 {offsets = [0, 1], sizes = [10, 1], strides = [1, 1]} : vector<10x2xf32> to vector<10x1xf32>
    %10 = vector.extract_strided_slice %3 {offsets = [1, 0], sizes = [1, 3], strides = [1, 1]} : vector<2x3xf32> to vector<1x3xf32>
    %11 = vector.broadcast %9 : vector<10x1xf32> to vector<10x3xf32>
    %12 = vector.broadcast %10 : vector<1x3xf32> to vector<10x3xf32>
    %13 = arith.mulf %11, %12 : vector<10x3xf32>
    %14 = arith.addf %8, %13 : vector<10x3xf32>
    %c0_4 = arith.constant 0 : index
    %c0_5 = arith.constant 0 : index
    %c0_6 = arith.constant 0 : index
    %15 = vector.load %arg2[%c0_4, %c0_5, %c0_6] : memref<2x10x3xf32, #tpu.memory_space<vmem>>, vector<1x10x3xf32>
    %16 = vector.shape_cast %15 : vector<1x10x3xf32> to vector<10x3xf32>
    %17 = vector.shape_cast %14 : vector<10x3xf32> to vector<1x10x3xf32>
    tpu.vector_store %arg2[%c0_4, %c0_5, %c0_6], %17 {strides = array<i32>} : memref<2x10x3xf32, #tpu.memory_space<vmem>>, vector<1x10x3xf32>,
    %c1 = arith.constant 1 : index
    %c0_7 = arith.constant 0 : index
    %c0_8 = arith.constant 0 : index
    %18 = vector.load %arg0[%c1, %c0_7, %c0_8] : memref<2x3x2xf32, #tpu.memory_space<vmem>>, vector<1x3x2xf32>
    %19 = vector.shape_cast %18 : vector<1x3x2xf32> to vector<3x2xf32>
    %20 = tpu.transpose %19, [1, 0] : vector<3x2xf32> -> vector<2x3xf32>
    %21 = vector.extract_strided_slice %0 {offsets = [0, 0], sizes = [10, 1], strides = [1, 1]} : vector<10x2xf32> to vector<10x1xf32>
    %22 = vector.extract_strided_slice %20 {offsets = [0, 0], sizes = [1, 3], strides = [1, 1]} : vector<2x3xf32> to vector<1x3xf32>
    %23 = vector.broadcast %21 : vector<10x1xf32> to vector<10x3xf32>
    %24 = vector.broadcast %22 : vector<1x3xf32> to vector<10x3xf32>
    %25 = arith.mulf %23, %24 : vector<10x3xf32>
    %26 = vector.extract_strided_slice %0 {offsets = [0, 1], sizes = [10, 1], strides = [1, 1]} : vector<10x2xf32> to vector<10x1xf32>
    %27 = vector.extract_strided_slice %20 {offsets = [1, 0], sizes = [1, 3], strides = [1, 1]} : vector<2x3xf32> to vector<1x3xf32>
    %28 = vector.broadcast %26 : vector<10x1xf32> to vector<10x3xf32>
    %29 = vector.broadcast %27 : vector<1x3xf32> to vector<10x3xf32>
    %30 = arith.mulf %28, %29 : vector<10x3xf32>
    %31 = arith.addf %25, %30 : vector<10x3xf32>
    %c1_9 = arith.constant 1 : index
    %c0_10 = arith.constant 0 : index
    %c0_11 = arith.constant 0 : index
    %32 = vector.load %arg2[%c1_9, %c0_10, %c0_11] : memref<2x10x3xf32, #tpu.memory_space<vmem>>, vector<1x10x3xf32>
    %33 = vector.shape_cast %32 : vector<1x10x3xf32> to vector<10x3xf32>
    %34 = vector.shape_cast %31 : vector<10x3xf32> to vector<1x10x3xf32>
    tpu.vector_store %arg2[%c1_9, %c0_10, %c0_11], %34 {strides = array<i32>} : memref<2x10x3xf32, #tpu.memory_space<vmem>>, vector<1x10x3xf32>,
    return
  }
}

</mosaic_0001>

<bundles_post_ra>
// kernel: _linear_permute_impl.1
= control target key start
LH: loop header
LB: loop body
LE: loop exit
PB: predicated region body
PF: predicated region fallthrough
CT: control target
= control target key end

     0   :  { %v146_v0 = vmov 1   ;;  %v147_v1 = vmov 0   ;;  %v56_v6 = vlaneseq  ;;  %vm78_vm0 = vcmask 23552   ;;  %s187_s1 = inlined_call_operand.vmem [shape: f32[10,2], index: 1, kind: input, shape index: {}]   ;;  %s188_s0 = inlined_call_operand.vmem [shape: f32[2,3,2], index: 0, kind: input, shape index: {}]   ;;  %s189_s2 = inlined_call_operand.vmem [shape: f32[2,10,3], index: 2, kind: output, shape index: {}]  }
   0x1   :  { %144 = vset.pattern.permute.xlu1 %v146_v0  ;;  %143 = vset.pattern.permute.xlu0 %v147_v1  ;;  %v11_v2 = vld [vmem:[%s187_s1] sm:$0xff]  ;;  %v12_v3 = vld [vmem:[%s187_s1 + $0x8] sm:$0x3]  ;;  %vm80_vm1 = vcmask 17408  }
   0x2   :  { %63 = vperm.xlu1 %144, %v11_v2   ;;  %48 = vperm.xlu0 %143, %v11_v2   ;;  %v13_v4 = vld [vmem:[%s188_s0] sm:$0x7]  ;;  %v137_v5 = vld [vmem:[%s188_s0 + $0x4] sm:$0x7]  ;;  %v57_v8 = vshrl.u32 %v56_v6, 7 }
   0x4   :  { %v58_v11 = vsub.s32 0, %v57_v8  ;;  %v72_v12 = vsub.s32 1, %v57_v8 }
   0x6   :  { %67 = vperm.xlu1 %144, %v12_v3   ;;  %53 = vperm.xlu0 %143, %v12_v3  }
  0x24   :  { %14 = vxpose.xlu0.b32.start.end [1/1] (short) (narrow) %v13_v4, 8 }
  0x2f   :  { %84 = vxpose.xlu1.b32.start.end [1/1] (short) (narrow) %v137_v5, 8 }
  0x4d   :  { %145 = vset.pattern.permute.xlu0 %v146_v0 }
  0x81   :  { %v49_v7 = vpop.permute.xlu0 %48  ;;  %v64_v9 = vpop.permute.xlu1 %63 }
  0x85   :  { %v54_v10 = vpop.permute.xlu0 %53  ;;  %v68_v16 = vpop.permute.xlu1 %67 }
  0xa4   :  { %v30_v13 = vpop.trf.xlu0 }
  0xa5   :  { %v59_v14 = vrot.slane %v30_v13, %v58_v11  ;;  %v73_v15 = vrot.slane %v30_v13, %v72_v12 }
  0xa7   :  { %v60_v17 = vmul.f32 %v59_v14, %v49_v7  ;;  %v61_v18 = vmul.f32 %v59_v14, %v54_v10  ;;  %v74_v19 = vmul.f32 %v73_v15, %v64_v9  ;;  %v75_v20 = vmul.f32 %v73_v15, %v68_v16 }
  0xa9   :  { %v76_v21 = vadd.f32 %v74_v19, %v60_v17  ;;  %v77_v22 = vadd.f32 %v75_v20, %v61_v18 }
  0xab   :  { %79 = vst.msk [vmem:[%s189_s2] sm:$0xff] %vm78_vm0, %v76_v21 }
  0xac   :  { %81 = vst.msk [vmem:[%s189_s2 + $0x8] sm:$0x3] %vm80_vm1, %v77_v22 }
  0xaf   :  { %v100_v23 = vpop.trf.xlu1 }
  0xb0   :  { %v119_v24 = vrot.slane %v100_v23, %v58_v11  ;;  %v125_v25 = vrot.slane %v100_v23, %v72_v12 }
  0xb2   :  { %v120_v26 = vmul.f32 %v119_v24, %v49_v7  ;;  %v121_v27 = vmul.f32 %v119_v24, %v54_v10  ;;  %v126_v28 = vmul.f32 %v125_v25, %v64_v9  ;;  %v127_v29 = vmul.f32 %v125_v25, %v68_v16 }
  0xb4   :  { %v128_v30 = vadd.f32 %v126_v28, %v120_v26  ;;  %v129_v31 = vadd.f32 %v127_v29, %v121_v27 }
  0xb6   :  { %138 = vst.msk [vmem:[%s189_s2 + $0x10] sm:$0xff] %vm78_vm0, %v128_v30 }
  0xb7   :  { %139 = vst.msk [vmem:[%s189_s2 + $0x18] sm:$0x3] %vm80_vm1, %v129_v31 }

</bundles_post_ra>
